<compile_context>
chip_gen: v6e
topology: v6e:2x2x1
jax: 0.10.0
libtpu: 0.0.40
codegen_flags: <defaults>
</compile_context>

<pallas_src>
import functools

import jax
import jax.numpy as jnp
import numpy as np
from jax import lax
from jax.experimental import pallas as pl
from jax.experimental.pallas import tpu as pltpu

EPS = 1e-5
VMEM_LIMIT_BYTES = 48 * 1024 * 1024   # <= v7x 64 MiB physical; ample on v5e/v6e


# ------------------------------ kernel helpers --------------------------------


def _bn_scale_shift(sum_ref, sq_ref, g_ref, b_ref, m_total):
    """Finalize per-channel BN scale/shift from accumulated sum / sum-of-squares."""
    mean = sum_ref[...] / m_total
    var = jnp.maximum(sq_ref[...] / m_total - mean * mean, 0.0)   # clamp (review)
    scale = g_ref[...] * lax.rsqrt(var + EPS)                     # EUP rsqrt
    shift = b_ref[...] - mean * scale
    return scale, shift


def _accumulate_stats(y, sum_ref, sq_ref):
    """Cross-tile per-channel sum / sum-of-squares accumulator (grid axis 0)."""
    @pl.when(pl.program_id(0) == 0)
    def _():
        sum_ref[...] = jnp.zeros_like(sum_ref)
        sq_ref[...] = jnp.zeros_like(sq_ref)
    sum_ref[...] += jnp.sum(y, axis=-1, keepdims=True)
    sq_ref[...] += jnp.sum(y * y, axis=-1, keepdims=True)


# --------------------------------- kernels ------------------------------------


def conv1_stats_kernel(x_ref, w_ref, y_ref, sum_ref, sq_ref):
    # 1x1 conv as (Cmid, Cin) @ (Cin, Mt) bf16 MXU matmul, f32 accumulation.
    # (conv bias == 0 and is cancelled by the BN mean subtraction -> dropped)
    y = jnp.dot(w_ref[...], x_ref[...].astype(jnp.bfloat16),
                preferred_element_type=jnp.float32)               # (Cmid, Mt) f32
    y_ref[...] = y
    _accumulate_stats(y, sum_ref, sq_ref)


def bnrelu_conv3x3_stats_kernel(y1_ref, s1_ref, q1_ref, g1_ref, b1_ref, w2_ref,
                                y2_ref, sum_ref, sq_ref, patch_ref,
                                *, height, width, m_total):
    # BN1 (from completed cross-tile stats) + ReLU, then the 3x3 / pad=1 conv
    # as ONE im2col matmul: 9 shifted taps via pltpu.roll (XLU) + in-kernel
    # iota validity masks, assembled into a bf16 (9*Cmid, Mt) patch slab.
    scale, shift = _bn_scale_shift(s1_ref, q1_ref, g1_ref, b1_ref, m_total)
    out1 = jnp.maximum(y1_ref[...] * scale + shift, 0.0)          # (P, Mt) f32
    P, Mt = out1.shape
    hw = height * width

    # Tiles are aligned to whole images, so lane l within the tile has
    # (h, w) = divmod(l % (H*W), W) and the mask is tile-position independent.
    lane = lax.broadcasted_iota(jnp.int32, (1, Mt), 1)
    pos = lane % hw
    h = pos // width
    w = pos % width

    for k in range(9):
        kh, kw = k // 3, k % 3
        dh, dw = kh - 1, kw - 1
        t = dh * width + dw
        shifted = out1 if t == 0 else pltpu.roll(out1, shift=(-t) % Mt, axis=1)
        valid = ((h + dh >= 0) & (h + dh < height) &
                 (w + dw >= 0) & (w + dw < width))
        # Any roll wrap-around / cross-image leak lands on a masked position.
        patch_ref[k * P:(k + 1) * P, :] = (
            jnp.where(valid, shifted, 0.0).astype(jnp.bfloat16))

    y = jnp.dot(w2_ref[...], patch_ref[...],                       # (P, 9P)@(9P, Mt)
                preferred_element_type=jnp.float32)
    y2_ref[...] = y
    _accumulate_stats(y, sum_ref, sq_ref)


def bnrelu_conv1x1_stats_kernel(y2_ref, s2_ref, q2_ref, g2_ref, b2_ref, w3_ref,
                                y3_ref, sum_ref, sq_ref, *, m_total):
    scale, shift = _bn_scale_shift(s2_ref, q2_ref, g2_ref, b2_ref, m_total)
    out2 = jnp.maximum(y2_ref[...] * scale + shift, 0.0).astype(jnp.bfloat16)
    y = jnp.dot(w3_ref[...], out2, preferred_element_type=jnp.float32)  # (4P, Mt)
    y3_ref[...] = y
    _accumulate_stats(y, sum_ref, sq_ref)


def bn_add_relu_kernel(y3_ref, s3_ref, q3_ref, g3_ref, b3_ref, x_ref, o_ref,
                       *, m_total):
    # Pure elementwise epilogue -> grid axis is "parallel" (megacore on v7x).
    scale, shift = _bn_scale_shift(s3_ref, q3_ref, g3_ref, b3_ref, m_total)
    o_ref[...] = jnp.maximum(y3_ref[...] * scale + shift + x_ref[...], 0.0)


# ----------------------------- parameter setup --------------------------------


def init_bottleneck_params(key, inplanes, planes):
    expansion = 4
    k1, k2, k3 = jax.random.split(key, 3)

    def conv_weight(k, out_c, in_c, ksize):
        stdv = float(np.sqrt(2.0 / (out_c * 3.0 * 3.0)))   # matches _Conv2d init
        w = jax.random.normal(k, (out_c, in_c, ksize, ksize), jnp.float32) * stdv
        mask = jnp.ones_like(w)                             # gen_conv_mask -> all ones
        return w * mask

    p = {}
    # conv1: 1x1, inplanes -> planes   (channels-first (Cout, Cin), bf16 MXU operand)
    w1 = conv_weight(k1, planes, inplanes, 1)
    p["w1"] = w1[:, :, 0, 0].astype(jnp.bfloat16)
    p["g1"] = jnp.ones((planes, 1), jnp.float32)
    p["be1"] = jnp.zeros((planes, 1), jnp.float32)

    # conv2: 3x3, planes -> planes
    w2 = conv_weight(k2, planes, planes, 3)                 # (O, I, kh, kw)
    p["w2_hwio"] = jnp.transpose(w2, (2, 3, 1, 0)).astype(jnp.bfloat16)   # reference
    # im2col weight: columns ordered (kh, kw, ci) to match the patch slab rows
    p["w2"] = (jnp.transpose(w2, (0, 2, 3, 1))
               .reshape(planes, 9 * planes).astype(jnp.bfloat16))
    p["g2"] = jnp.ones((planes, 1), jnp.float32)
    p["be2"] = jnp.zeros((planes, 1), jnp.float32)

    # conv3: 1x1, planes -> planes * expansion
    w3 = conv_weight(k3, planes * expansion, planes, 1)
    p["w3"] = w3[:, :, 0, 0].astype(jnp.bfloat16)
    p["g3"] = jnp.ones((planes * expansion, 1), jnp.float32)
    p["be3"] = jnp.zeros((planes * expansion, 1), jnp.float32)
    # NOTE: the _Conv2d bias is zero-initialized and exactly removed by the BN
    # mean subtraction, so no bias arrays are passed to the kernels.
    return p


# ---------------------------------- forward -----------------------------------


def bottleneck_forward(x_nchw, p, planes, *, imgs_per_tile=1):
    expansion = 4
    N, Cin, H, W = x_nchw.shape
    Cmid = planes
    Cout = planes * expansion
    assert Cin == Cout, "downsample=None path requires inplanes == planes*4"
    HW = H * W
    M = N * HW
    Mt = imgs_per_tile * HW                 # image-aligned M tile (no conv halos)
    assert M % Mt == 0 and Mt % 128 == 0, (M, Mt)
    n_tiles = M // Mt
    m_total = float(M)

    # lane-dense channels-first slab: (C, N*H*W), M on the lane axis
    x_cf = jnp.transpose(x_nchw, (1, 0, 2, 3)).reshape(Cin, M).astype(jnp.float32)

    tile = lambda i: (0, i)                 # activations: tiled along M
    const = lambda i: (0, 0)                # weights/stats: resident in VMEM
    stat_spec = lambda c: pl.BlockSpec((c, 1), const)
    stat_shape = lambda c: jax.ShapeDtypeStruct((c, 1), jnp.float32)

    cp_red = pltpu.CompilerParams(          # stats accumulator => arbitrary
        dimension_semantics=("arbitrary",), vmem_limit_bytes=VMEM_LIMIT_BYTES)
    cp_par = pltpu.CompilerParams(          # elementwise epilogue => parallel
        dimension_semantics=("parallel",), vmem_limit_bytes=VMEM_LIMIT_BYTES)

    # ---- pass 1: conv1 (1x1) + stats1 ----------------------------------------
    y1, s1, q1 = pl.pallas_call(
        conv1_stats_kernel,
        grid=(n_tiles,),
        in_specs=[pl.BlockSpec((Cin, Mt), tile),
                  pl.BlockSpec((Cmid, Cin), const)],
        out_specs=[pl.BlockSpec((Cmid, Mt), tile), stat_spec(Cmid), stat_spec(Cmid)],
        out_shape=(jax.ShapeDtypeStruct((Cmid, M), jnp.float32),
                   stat_shape(Cmid), stat_shape(Cmid)),
        compiler_params=cp_red,
        cost_estimate=pl.CostEstimate(
            flops=2 * Cmid * Cin * M, transcendentals=0,
            bytes_accessed=4 * M * (Cin + Cmid) + 2 * Cmid * Cin),
    )(x_cf, p["w1"])

    # ---- pass 2: BN1+ReLU -> conv2 (3x3 im2col) + stats2 ---------------------
    k2 = functools.partial(bnrelu_conv3x3_stats_kernel,
                           height=H, width=W, m_total=m_total)
    y2, s2, q2 = pl.pallas_call(
        k2,
        grid=(n_tiles,),
        in_specs=[pl.BlockSpec((Cmid, Mt), tile),
                  stat_spec(Cmid), stat_spec(Cmid), stat_spec(Cmid), stat_spec(Cmid),
                  pl.BlockSpec((Cmid, 9 * Cmid), const)],
        out_specs=[pl.BlockSpec((Cmid, Mt), tile), stat_spec(Cmid), stat_spec(Cmid)],
        out_shape=(jax.ShapeDtypeStruct((Cmid, M), jnp.float32),
                   stat_shape(Cmid), stat_shape(Cmid)),
        scratch_shapes=[pltpu.VMEM((9 * Cmid, Mt), jnp.bfloat16)],   # bf16 patch slab
        compiler_params=cp_red,
        cost_estimate=pl.CostEstimate(
            flops=2 * 9 * Cmid * Cmid * M, transcendentals=Cmid,
            bytes_accessed=4 * M * 2 * Cmid + 2 * 9 * Cmid * Cmid),
    )(y1, s1, q1, p["g1"], p["be1"], p["w2"])

    # ---- pass 3: BN2+ReLU -> conv3 (1x1) + stats3 ----------------------------
    k3 = functools.partial(bnrelu_conv1x1_stats_kernel, m_total=m_total)
    y3, s3, q3 = pl.pallas_call(
        k3,
        grid=(n_tiles,),
        in_specs=[pl.BlockSpec((Cmid, Mt), tile),
                  stat_spec(Cmid), stat_spec(Cmid), stat_spec(Cmid), stat_spec(Cmid),
                  pl.BlockSpec((Cout, Cmid), const)],
        out_specs=[pl.BlockSpec((Cout, Mt), tile), stat_spec(Cout), stat_spec(Cout)],
        out_shape=(jax.ShapeDtypeStruct((Cout, M), jnp.float32),
                   stat_shape(Cout), stat_shape(Cout)),
        compiler_params=cp_red,
        cost_estimate=pl.CostEstimate(
            flops=2 * Cout * Cmid * M, transcendentals=Cmid,
            bytes_accessed=4 * M * (Cmid + Cout) + 2 * Cout * Cmid),
    )(y2, s2, q2, p["g2"], p["be2"], p["w3"])

    # ---- pass 4: BN3 + residual add + ReLU ("parallel" for v7x megacore) -----
    k4 = functools.partial(bn_add_relu_kernel, m_total=m_total)
    out_cf = pl.pallas_call(
        k4,
        grid=(n_tiles,),
        in_specs=[pl.BlockSpec((Cout, Mt), tile),
                  stat_spec(Cout), stat_spec(Cout), stat_spec(Cout), stat_spec(Cout),
                  pl.BlockSpec((Cout, Mt), tile)],
        out_specs=pl.BlockSpec((Cout, Mt), tile),
        out_shape=jax.ShapeDtypeStruct((Cout, M), jnp.float32),
        compiler_params=cp_par,
        cost_estimate=pl.CostEstimate(
            flops=3 * Cout * M, transcendentals=Cout,
            bytes_accessed=4 * M * 3 * Cout),
    )(y3, s3, q3, p["g3"], p["be3"], x_cf)

    # back to the PyTorch NCHW convention
    return jnp.transpose(out_cf.reshape(Cout, N, H, W), (1, 0, 2, 3))


# ----------------------------- pure-JAX reference ------------------------------


def bottleneck_reference(x_nchw, p, planes):
    """Mirrors the kernel's bf16 matmul operands (f32 accumulation, f32 BN)."""
    x = jnp.transpose(x_nchw, (0, 2, 3, 1)).astype(jnp.float32)     # NHWC
    bf = jnp.bfloat16

    def bn(y, gamma, beta):
        mean = jnp.mean(y, axis=(0, 1, 2), keepdims=True)
        var = jnp.mean((y - mean) ** 2, axis=(0, 1, 2), keepdims=True)
        return ((y - mean) * lax.rsqrt(var + EPS) * gamma.reshape(1, 1, 1, -1)
                + beta.reshape(1, 1, 1, -1))

    out = jnp.einsum("nhwc,dc->nhwd", x.astype(bf), p["w1"],
                     preferred_element_type=jnp.float32)
    out = jnp.maximum(bn(out, p["g1"], p["be1"]), 0.0)
    out = lax.conv_general_dilated(
        out.astype(bf), p["w2_hwio"], window_strides=(1, 1), padding="SAME",
        dimension_numbers=("NHWC", "HWIO", "NHWC"),
        preferred_element_type=jnp.float32)
    out = jnp.maximum(bn(out, p["g2"], p["be2"]), 0.0)
    out = jnp.einsum("nhwc,dc->nhwd", out.astype(bf), p["w3"],
                     preferred_element_type=jnp.float32)
    out = jnp.maximum(bn(out, p["g3"], p["be3"]) + x, 0.0)
    return jnp.transpose(out, (0, 3, 1, 2))


# ------------------------------------ main -------------------------------------

if __name__ == "__main__":
    inplanes, planes = 128, 32   # inplanes == planes*4 (downsample=None path);
                                 # MXU/sublane-friendly channel counts (review)
    N, H, W = 2, 16, 16          # Mt = H*W = 256 lanes per image tile, 2 tiles

    key = jax.random.PRNGKey(0)
    kx, kp = jax.random.split(key)
    x = jax.random.normal(kx, (N, inplanes, H, W), jnp.float32)     # NCHW input
    params = init_bottleneck_params(kp, inplanes, planes)

    out = jax.block_until_ready(bottleneck_forward(x, params, planes))
    ref = jax.block_until_ready(bottleneck_reference(x, params, planes))

    assert out.shape == (N, planes * 4, H, W), out.shape
    # bf16 MXU operands (f32 accumulation) -> widened tolerance vs pure-f32.
    if not np.allclose(np.asarray(out), np.asarray(ref), atol=1e-2, rtol=1e-2):
        err = float(np.max(np.abs(np.asarray(out) - np.asarray(ref))))
        raise AssertionError(
            f"Pallas kernel output mismatch vs reference (max abs err {err})")

    print("KERNEL_OK")
</pallas_src>

<mosaic_0001>
module attributes {stable_mosaic.version = 11 : i64} {
  func.func @conv1_stats_kernel(%arg0: i32, %arg1: memref<128x256xf32, #tpu.memory_space<vmem>>, %arg2: memref<32x128xbf16, #tpu.memory_space<vmem>>, %arg3: memref<32x256xf32, #tpu.memory_space<vmem>>, %arg4: memref<32x1xf32, #tpu.memory_space<vmem>>, %arg5: memref<32x1xf32, #tpu.memory_space<vmem>>) attributes {dimension_semantics = [#tpu.dimension_semantics<arbitrary>], iteration_bounds = array<i64: 2>, scalar_prefetch = 0 : i64, scratch_operands = 0 : i64, tpu.core_type = #tpu.core_type<tc>, window_params = [{transform_indices = @transform_0, window_bounds = array<i64: 128, 256>}, {pipeline_mode = #tpu.pipeline_mode<synchronous>, transform_indices = @transform_1, window_bounds = array<i64: 32, 128>}, {transform_indices = @transform_2, window_bounds = array<i64: 32, 256>}, {pipeline_mode = #tpu.pipeline_mode<synchronous>, transform_indices = @transform_3, window_bounds = array<i64: 32, 1>}, {pipeline_mode = #tpu.pipeline_mode<synchronous>, transform_indices = @transform_4, window_bounds = array<i64: 32, 1>}]} {
    %c0 = arith.constant 0 : index
    %c0_0 = arith.constant 0 : index
    %0 = vector.load %arg2[%c0, %c0_0] : memref<32x128xbf16, #tpu.memory_space<vmem>>, vector<32x128xbf16>
    %c0_1 = arith.constant 0 : index
    %c0_2 = arith.constant 0 : index
    %1 = vector.load %arg1[%c0_1, %c0_2] : memref<128x256xf32, #tpu.memory_space<vmem>>, vector<128x256xf32>
    %2 = arith.truncf %1 : vector<128x256xf32> to vector<128x256xbf16>
    %cst = arith.constant dense<0.000000e+00> : vector<32x256xf32>
    %3 = tpu.matmul %0, %2, %cst {dimension_numbers = #tpu.dot_dimension_numbers<[1], [0], [0], [1], [0, 0, 1, 1], [], []>} : vector<32x128xbf16>, vector<128x256xbf16>, vector<32x256xf32> -> vector<32x256xf32>
    %c0_3 = arith.constant 0 : index
    %c0_4 = arith.constant 0 : index
    %4 = vector.load %arg3[%c0_3, %c0_4] : memref<32x256xf32, #tpu.memory_space<vmem>>, vector<32x256xf32>
    tpu.vector_store %arg3[%c0_3, %c0_4], %3 {strides = array<i32>} : memref<32x256xf32, #tpu.memory_space<vmem>>, vector<32x256xf32>,
    %c0_i32 = arith.constant 0 : i32
    %5 = arith.cmpi eq, %arg0, %c0_i32 : i32
    %6 = arith.extui %5 : i1 to i32
    %c0_i32_5 = arith.constant 0 : i32
    %7 = arith.cmpi ne, %6, %c0_i32_5 : i32
    scf.if %7 {
      %cst_16 = arith.constant 0.000000e+00 : f32
      %19 = vector.broadcast %cst_16 : f32 to vector<32x1xf32>
      %c0_17 = arith.constant 0 : index
      %c0_18 = arith.constant 0 : index
      %20 = vector.load %arg4[%c0_17, %c0_18] : memref<32x1xf32, #tpu.memory_space<vmem>>, vector<32x1xf32>
      tpu.vector_store %arg4[%c0_17, %c0_18], %19 {strides = array<i32>} : memref<32x1xf32, #tpu.memory_space<vmem>>, vector<32x1xf32>,
      %cst_19 = arith.constant 0.000000e+00 : f32
      %21 = vector.broadcast %cst_19 : f32 to vector<32x1xf32>
      %c0_20 = arith.constant 0 : index
      %c0_21 = arith.constant 0 : index
      %22 = vector.load %arg5[%c0_20, %c0_21] : memref<32x1xf32, #tpu.memory_space<vmem>>, vector<32x1xf32>
      tpu.vector_store %arg5[%c0_20, %c0_21], %21 {strides = array<i32>} : memref<32x1xf32, #tpu.memory_space<vmem>>, vector<32x1xf32>,
    } else {
    }
    %c0_6 = arith.constant 0 : index
    %c0_7 = arith.constant 0 : index
    %8 = vector.load %arg4[%c0_6, %c0_7] : memref<32x1xf32, #tpu.memory_space<vmem>>, vector<32x1xf32>
    %cst_8 = arith.constant dense<0.000000e+00> : vector<32xf32>
    %9 = vector.multi_reduction <add>, %3, %cst_8 [1] : vector<32x256xf32> to vector<32xf32>
    %10 = vector.shape_cast %9 : vector<32xf32> to vector<32x1xf32>
    %11 = arith.addf %8, %10 : vector<32x1xf32>
    %c0_9 = arith.constant 0 : index
    %c0_10 = arith.constant 0 : index
    %12 = vector.load %arg4[%c0_9, %c0_10] : memref<32x1xf32, #tpu.memory_space<vmem>>, vector<32x1xf32>
    tpu.vector_store %arg4[%c0_9, %c0_10], %11 {strides = array<i32>} : memref<32x1xf32, #tpu.memory_space<vmem>>, vector<32x1xf32>,
    %c0_11 = arith.constant 0 : index
    %c0_12 = arith.constant 0 : index
    %13 = vector.load %arg5[%c0_11, %c0_12] : memref<32x1xf32, #tpu.memory_space<vmem>>, vector<32x1xf32>
    %14 = arith.mulf %3, %3 : vector<32x256xf32>
    %cst_13 = arith.constant dense<0.000000e+00> : vector<32xf32>
    %15 = vector.multi_reduction <add>, %14, %cst_13 [1] : vector<32x256xf32> to vector<32xf32>
    %16 = vector.shape_cast %15 : vector<32xf32> to vector<32x1xf32>
    %17 = arith.addf %13, %16 : vector<32x1xf32>
    %c0_14 = arith.constant 0 : index
    %c0_15 = arith.constant 0 : index
    %18 = vector.load %arg5[%c0_14, %c0_15] : memref<32x1xf32, #tpu.memory_space<vmem>>, vector<32x1xf32>
    tpu.vector_store %arg5[%c0_14, %c0_15], %17 {strides = array<i32>} : memref<32x1xf32, #tpu.memory_space<vmem>>, vector<32x1xf32>,
    return
  }
  func.func @transform_0(%arg0: i32) -> (i32, i32) {
    %c0_i32 = arith.constant 0 : i32
    %c0_i32_0 = arith.constant 0 : i32
    return %c0_i32, %arg0 : i32, i32
  }
  func.func @transform_1(%arg0: i32) -> (i32, i32) {
    %c0_i32 = arith.constant 0 : i32
    %c0_i32_0 = arith.constant 0 : i32
    %c0_i32_1 = arith.constant 0 : i32
    return %c0_i32, %c0_i32_0 : i32, i32
  }
  func.func @transform_2(%arg0: i32) -> (i32, i32) {
    %c0_i32 = arith.constant 0 : i32
    %c0_i32_0 = arith.constant 0 : i32
    return %c0_i32, %arg0 : i32, i32
  }
  func.func @transform_3(%arg0: i32) -> (i32, i32) {
    %c0_i32 = arith.constant 0 : i32
    %c0_i32_0 = arith.constant 0 : i32
    %c0_i32_1 = arith.constant 0 : i32
    return %c0_i32, %c0_i32_0 : i32, i32
  }
  func.func @transform_4(%arg0: i32) -> (i32, i32) {
    %c0_i32 = arith.constant 0 : i32
    %c0_i32_0 = arith.constant 0 : i32
    %c0_i32_1 = arith.constant 0 : i32
    return %c0_i32, %c0_i32_0 : i32, i32
  }
}

</mosaic_0001>

<bundles_post_ra>
// kernel: tpu_custom_call.1
= control target key start
LH: loop header
LB: loop body
LE: loop exit
PB: predicated region body
PF: predicated region fallthrough
CT: control target
= control target key end

     0   :  { %10 = vsyncpa [#allocation3], 0  ;;  %s1113_s0 = inlined_call_operand.hbm [shape: f32[128,512], index: 0, kind: input, shape index: {}]   ;;  %s1114_s1 = inlined_call_operand.hbm [shape: bf16[32,128], index: 1, kind: input, shape index: {}]   ;;  %s1115_s2 = inlined_call_operand.hbm [shape: f32[32,512], index: 2, kind: output, shape index: {0}]   ;;  %s1116_s3 = inlined_call_operand.vmem [shape: f32[32,1], index: 3, kind: output, shape index: {1}]   ;;  %s1117_s4 = inlined_call_operand.vmem [shape: f32[32,1], index: 4, kind: output, shape index: {2}]  }
   0x1   :  { %12 = vsyncpa [#allocation3 + $0x1], 0 }
   0x2   :  { %13 = vsyncpa [#allocation6], 0 }
   0x3   :  { %14 = vsyncpa [#allocation4], 0 }
   0x4   :  { %16 = vsyncpa [#allocation4 + $0x1], 0  ;;  %s801_s15 = smov 0   ;;  %s803_s16 = smov 0  }
   0x5   :  { %s805_s17 = smov 0   ;;  %s807_s18 = smov 0  }
   0x6 LB: > { %s822_s19 = sadd.s32 4294967295, %s761_s18   ;;  %s533_s20 = sadd.s32 4294967294, %s761_s18   ;;  %s761_s18 = sphi %s807_s18, %s1140_s18   ;;  %s757_s17 = sphi %s805_s17, %s1139_s17   ;;  %s753_s16 = sphi %s803_s16, %s1138_s16   ;;  %s749_s15 = sphi %s801_s15, %s1137_s15  }
   0x7   : > { %s826_s21 = sadd.s32 1, %s761_s18   ;;  %s29_s22 = sadd.s32 1, %s757_s17 }
   0x8   : > { %s26_s23 = ssub.s32 %s761_s18, %s826_s21  ;;  %p36_p0 = scmp.ne.s32.totalorder %s757_s17, %s753_s16 }
   0x9   : > { %p27_p1 = scmp.eq.s32.totalorder %s26_s23, 0  ;;  %p37_p2 = scmp.eq.s32.totalorder %s761_s18, 0 }
   0xa   : > { %p42_p3 = scmp.ne.s32.totalorder %s753_s16, %s749_s15  ;;  %p1121_p4 = scmp.eq.s32.totalorder %s822_s19, 0 }
   0xb   : > { %s838_s24 = scalar_select %p27_p1, %s757_s17, %s29_s22  }
   0xc   : > { %p840_p5 = por %p37_p2, %p36_p0  ;;  %p846_p6 = por %p1121_p4, %p42_p3 }
   0xd   : > { %p87_p7 = scmp.eq.s32.totalorder %s822_s19, 1  ;;  %p93_p8 = scmp.eq.s32.totalorder %s533_s20, 1 }
   0xe   : > { %s1123_s26 = scalar_select %p846_p6, 1, 0 }
   0xf   : > { %p534_p9 = scmp.ge.s32.totalorder %s761_s18, 1  ;;  %p142_p10 = scmp.lt.s32.totalorder %s761_s18, 3 }
  0x10   : > { %p853_p11 = por %p87_p7, %p36_p0  ;;  %p857_p12 = por %p93_p8, %p42_p3 }
  0x11   : > { %p861_p13 = pnand %p534_p9, %p142_p10  ;;  %s763_s30 = smov [#allocation5]  }
  0x12   : > { %s1124_s27 = scalar_select %p853_p11, 1, 0 }
  0x13   : > { %s1125_s28 = scalar_select %p857_p12, 1, 0 }
  0x14   : > { %s1126_s29 = scalar_select %p861_p13, 1, 0 }
  0x15   : > { %p578_p2 = pneg %p861_p13  ;;  %s154_s5 = sshll.u32 %s763_s30, 4  ;;  %s155_s5 = int_to_ptr.vmem [resolvable:$true] %s154_s5 }
  0x16   : > { %p591_p7 = scmp.lt.s32.totalorder %s761_s18, 2  ;;  %s168_s7 = sand.u32 1, %s757_s17  }
  0x17   : > { %p870_p0 = pnand %p578_p2, %p1121_p4  ;;  %s650_s8 = scalar_lea.vmem %s155_s5, 256 }
  0x18   : > { %p651_p9 = scmp.ne.s32.totalorder %s155_s5, %s650_s8  ;;  %p658_p12 = scmp.lt.s32.totalorder %s155_s5, %s155_s5 }
  0x19   : > { %p641_p8 = pneg %p870_p0  ;;  %p659_p11 = scmp.lt.s32.totalorder %s650_s8, %s650_s8 }
  0x1b   : > { %p653_p10 = pnand %p651_p9, %p641_p8  ;;  %p660_p6 = por %p659_p11, %p658_p12 }
  0x1d   : > { %p654_p1 = pneg %p653_p10 }
  0x1f   : > { %p661_p13 = pnand %p660_p6, %p654_p1 }
  0x21   : > { %664 = shalt.err (!%p661_p13)
}
  0x22   : > { %s764_s9 = smov 64   ;;  %s765_s10 = smov 4  }
  0x23   : > { %581 = dma.hbm_to_vmem [thread:$0]  (!%p870_p0), %s1114_s1, 256, %s155_s5, [#allocation6], %s764_s9, %s764_s9, %s765_s10  }
  0x24   : > { %p888_p2 = pnand %p591_p7, %p840_p5  ;;  %s537_s14 = sshll.u32 %s168_s7, 8 }
  0x25   : > { %s552_s20 = sshll.u32 %s761_s18, 8  ;;  %s172_s6 = scalar_lea.vmem [#allocation2], %s537_s14 }
  0x26   : > { %s896_s30 = scalar_lea.hbm %s1113_s0, %s552_s20  ;;  %s179_s8 = sshll.u32 %s172_s6, 4  ;;  %s898_s8 = int_to_ptr.vmem [resolvable:$true] %s179_s8 }
  0x27   : > { %s900_s25 = scalar_lea.sflag [#allocation3], %s168_s7  ;;  %s665_s5 = scalar_lea.hbm %s896_s30, 4096 }
  0x28   : > { %p666_p5 = scmp.ne.s32.totalorder %s896_s30, %s665_s5  ;;  %p667_p6 = pneg %p888_p2 }
  0x29   : > { %s670_s11 = scalar_lea.hbm %s1113_s0, 8192  ;;  %p671_p13 = scmp.lt.s32.totalorder %s896_s30, %s1113_s0 }
  0x2a   : > { %p668_p11 = pnand %p667_p6, %p666_p5  ;;  %p672_p1 = scmp.lt.s32.totalorder %s670_s11, %s665_s5 }
  0x2c   : > { %p669_p12 = pneg %p668_p11  ;;  %p673_p0 = por %p672_p1, %p671_p13 }
  0x2e   : > { %p674_p7 = pnand %p673_p0, %p669_p12 }
  0x30   : > { %677 = shalt.err (!%p674_p7)
}
  0x31   : > { %s678_s7 = scalar_lea.vmem %s898_s8, 4096  ;;  %s766_s14 = smov [#allocation2]  }
  0x32   : > { %p679_p8 = scmp.ne.s32.totalorder %s898_s8, %s678_s7  ;;  %s683_s22 = sshll.u32 %s766_s14, 4  ;;  %s684_s22 = int_to_ptr.vmem [resolvable:$false] %s683_s22 }
  0x33   : > { %s685_s23 = scalar_lea.vmem %s684_s22, 8192  ;;  %p686_p5 = scmp.lt.s32.totalorder %s898_s8, %s684_s22 }
  0x34   : > { %p681_p9 = pnand %p679_p8, %p667_p6  ;;  %p687_p11 = scmp.lt.s32.totalorder %s685_s23, %s678_s7 }
  0x36   : > { %p682_p10 = pneg %p681_p9  ;;  %p688_p3 = por %p687_p11, %p686_p5 }
  0x38   : > { %p689_p4 = pnand %p688_p3, %p682_p10 }
  0x3a   : > { %692 = shalt.err (!%p689_p4)
}
  0x3b   : > { %s767_s6 = smov 512   ;;  %s768_s5 = smov 256  }
  0x3c   : > { %s769_s9 = smov 16   ;;  %p1129_p6 = scmp.ne.s32.totalorder %s1126_s29, 0 }
  0x3d   : > { %585 = dma.hbm_to_vmem [thread:$0]  (!%p888_p2), %s896_s30, 4096, %s898_s8, %s900_s25, %s767_s6, %s768_s5, %s769_s9  }
  0x3e   : > { %191 = sbr.rel (%p1129_p6) target bundleno = 466 (0x1d2), region = 28  ;;  %s924_s10 = sand.u32 (!%p1129_p6), 1, %s753_s16  }
  0x3f   : > { %s541_s11 = sshll.u32 (!%p1129_p6), %s924_s10, 8  ;;  %s194_s12 = scalar_lea.sflag (!%p1129_p6), [#allocation3], %s924_s10 }
  0x40   : > { %s928_s20 = scalar_lea.vmem (!%p1129_p6), [#allocation2], %s541_s11  ;;  %p1130_p4 = scmp.ne.s32.totalorder (!%p1129_p6), %s1123_s26, 0 }
  0x43   : > { %736 = dma.done.wait (%p1130_p4), %s194_s12, 4096  }
  0x44   : > { %738 = vsyncadd (%p1130_p4), %s194_s12, 4294963200  ;;  %p1131_p3 = scmp.eq.s32.totalorder %s822_s19, 0 }
  0x46   : > { %740 = dma.done.wait (%p1131_p3), [#allocation6], 256   ;;  %p1132_p2 = pmov %p1131_p3 }
  0x47   : > { %v770_v0 = vmov 0   ;;  %v262_v1 = vld [vmem:[%s928_s20 + $0xe8] sm:$0xff]  ;;  %v264_v2 = vld [vmem:[%s928_s20 + $0xf8] sm:$0xff]  ;;  %v261_v3 = vld [vmem:[%s928_s20 + $0xe0] sm:$0xff]  ;;  %s543_s26 = sshll.u32 %s924_s10, 6  ;;  %p1133_p12 = scmp.ne.s32.totalorder %s822_s19, 0 }
  0x48   : > { %742 = vsyncadd (%p1132_p2), [#allocation6], 4294967040  ;;  %325 = vmatprep.mubr.bf16.mxu0 %v770_v0  ;;  %335 = vmatprep.mubr.bf16.mxu1 %v770_v0  ;;  %v280_v4 = vpack.c.bf16 %v264_v2, %v262_v1  ;;  %v263_v5 = vld [vmem:[%s928_s20 + $0xf0] sm:$0xff]  ;;  %v258_v6 = vld [vmem:[%s928_s20 + $0xc8] sm:$0xff]  ;;  %s971_s29 = scalar_lea.vmem [#allocation7], %s543_s26 }
  0x49   : > { %v260_v7 = vld [vmem:[%s928_s20 + $0xd8] sm:$0xff]  ;;  %v279_v8 = vpack.c.bf16 %v263_v5, %v261_v3  ;;  %v257_v10 = vld [vmem:[%s928_s20 + $0xc0] sm:$0xff]  ;;  %v259_v11 = vld [vmem:[%s928_s20 + $0xd0] sm:$0xff] }
  0x4a   : > { %v278_v9 = vpack.c.bf16 %v260_v7, %v258_v6  ;;  %v254_v12 = vld [vmem:[%s928_s20 + $0xa8] sm:$0xff]  ;;  %293 = vmatprep.subr.bf16.mxu0 %v280_v4  ;;  %554 = vmatprep.subr.bf16.mxu1 %v280_v4  ;;  %v256_v13 = vld [vmem:[%s928_s20 + $0xb8] sm:$0xff]  ;;  %v277_v14 = vpack.c.bf16 %v259_v11, %v257_v10  ;;  %v253_v16 = vld [vmem:[%s928_s20 + $0xa0] sm:$0xff] }
  0x4b   : > { %294 = vmatpush1.bf16.msra.mxu0 %v279_v8  ;;  %562 = vmatpush1.bf16.msra.mxu1 %v279_v8  ;;  %v276_v15 = vpack.c.bf16 %v256_v13, %v254_v12  ;;  %v255_v17 = vld [vmem:[%s928_s20 + $0xb0] sm:$0xff]  ;;  %v250_v18 = vld [vmem:[%s928_s20 + $0x88] sm:$0xff]  ;;  %v252_v19 = vld [vmem:[%s928_s20 + $0x98] sm:$0xff] }
  0x4c   : > { %295 = vmatprep.subr.bf16.mxu0 %v278_v9  ;;  %555 = vmatprep.subr.bf16.mxu1 %v278_v9  ;;  %v275_v20 = vpack.c.bf16 %v255_v17, %v253_v16  ;;  %v274_v21 = vpack.c.bf16 %v252_v19, %v250_v18  ;;  %v249_v22 = vld [vmem:[%s928_s20 + $0x80] sm:$0xff]  ;;  %v251_v23 = vld [vmem:[%s928_s20 + $0x90] sm:$0xff]  ;;  %v246_v24 = vld [vmem:[%s928_s20 + $0x68] sm:$0xff] }
  0x4d   : > { %v248_v25 = vld [vmem:[%s928_s20 + $0x78] sm:$0xff]  ;;  %v273_v26 = vpack.c.bf16 %v251_v23, %v249_v22  ;;  %v245_v28 = vld [vmem:[%s928_s20 + $0x60] sm:$0xff]  ;;  %v247_v29 = vld [vmem:[%s928_s20 + $0x70] sm:$0xff] }
  0x4e   : > { %v272_v27 = vpack.c.bf16 %v248_v25, %v246_v24  ;;  %v242_v30 = vld [vmem:[%s928_s20 + $0x48] sm:$0xff]  ;;  %v244_v31 = vld [vmem:[%s928_s20 + $0x58] sm:$0xff]  ;;  %v271_v32 = vpack.c.bf16 %v247_v29, %v245_v28  ;;  %v241_v34 = vld [vmem:[%s928_s20 + $0x40] sm:$0xff] }
  0x4f   : > { %296 = vmatpush1.bf16.msra.mxu0 %v277_v14  ;;  %563 = vmatpush1.bf16.msra.mxu1 %v277_v14  ;;  %v270_v33 = vpack.c.bf16 %v244_v31, %v242_v30  ;;  %v243_v35 = vld [vmem:[%s928_s20 + $0x50] sm:$0xff]  ;;  %v238_v36 = vld [vmem:[%s928_s20 + $0x28] sm:$0xff]  ;;  %v240_v37 = vld [vmem:[%s928_s20 + $0x38] sm:$0xff] }
  0x50   : > { %297 = vmatprep.subr.bf16.mxu0 %v276_v15  ;;  %556 = vmatprep.subr.bf16.mxu1 %v276_v15  ;;  %v269_v38 = vpack.c.bf16 %v243_v35, %v241_v34  ;;  %v268_v39 = vpack.c.bf16 %v240_v37, %v238_v36  ;;  %v237_v40 = vld [vmem:[%s928_s20 + $0x20] sm:$0xff]  ;;  %v239_v41 = vld [vmem:[%s928_s20 + $0x30] sm:$0xff]  ;;  %v234_v42 = vld [vmem:[%s928_s20 + $0x8] sm:$0xff] }
  0x51   : > { %v236_v43 = vld [vmem:[%s928_s20 + $0x18] sm:$0xff]  ;;  %v267_v44 = vpack.c.bf16 %v239_v41, %v237_v40  ;;  %v233_v46 = vld [vmem:[%s928_s20] sm:$0xff]  ;;  %v235_v47 = vld [vmem:[%s928_s20 + $0x10] sm:$0xff] }
  0x52   : > { %v266_v45 = vpack.c.bf16 %v236_v43, %v234_v42  ;;  %v265_v48 = vpack.c.bf16 %v235_v47, %v233_v46  ;;  %v637_v49 = vld [vmem:[#allocation5] sm:$0xff]   ;;  %v638_v50 = vld [vmem:[#allocation5 + $0x8] sm:$0xff]  }
  0x53   : > { %298 = vmatpush1.bf16.msra.mxu0 %v275_v20  ;;  %564 = vmatpush1.bf16.msra.mxu1 %v275_v20 }
  0x54   : > { %299 = vmatprep.subr.bf16.mxu0 %v274_v21  ;;  %557 = vmatprep.subr.bf16.mxu1 %v274_v21 }
  0x57   : > { %300 = vmatpush1.bf16.msra.mxu0 %v273_v26  ;;  %565 = vmatpush1.bf16.msra.mxu1 %v273_v26 }
  0x58   : > { %301 = vmatprep.subr.bf16.mxu0 %v272_v27  ;;  %558 = vmatprep.subr.bf16.mxu1 %v272_v27 }
  0x5b   : > { %302 = vmatpush1.bf16.msra.mxu0 %v271_v32  ;;  %566 = vmatpush1.bf16.msra.mxu1 %v271_v32 }
  0x5c   : > { %303 = vmatprep.subr.bf16.mxu0 %v270_v33  ;;  %559 = vmatprep.subr.bf16.mxu1 %v270_v33 }
  0x5f   : > { %304 = vmatpush1.bf16.msra.mxu0 %v269_v38  ;;  %567 = vmatpush1.bf16.msra.mxu1 %v269_v38 }
  0x60   : > { %305 = vmatprep.subr.bf16.mxu0 %v268_v39  ;;  %560 = vmatprep.subr.bf16.mxu1 %v268_v39 }
  0x63   : > { %306 = vmatpush1.bf16.msra.mxu0 %v267_v44  ;;  %568 = vmatpush1.bf16.msra.mxu1 %v267_v44 }
  0x64   : > { %307 = vmatprep.subr.bf16.mxu0 %v266_v45  ;;  %561 = vmatprep.subr.bf16.mxu1 %v266_v45 }
  0x67   : > { %308 = vmatpush1.bf16.msra.mxu0 %v265_v48  ;;  %569 = vmatpush1.bf16.msra.mxu1 %v265_v48 }
  0x6a   : > { %326 = vmatmul.mubr.bf16.vlgmr.msra.gmra.mxu0 %v637_v49  ;;  %336 = vmatmul.mubr.bf16.vlgmr.msra.gmra.mxu1 %v638_v50 }
 0x12a   : > { %v327_v51 = vpop.f32.mrf.mxu0  ;;  %v337_v52 = vpop.f32.mrf.mxu1 }
 0x12b   : > { %346 = vst [vmem:[%s971_s29] sm:$0xff] %v327_v51  ;;  %350 = vst [vmem:[%s971_s29 + $0x20] sm:$0xff] %v337_v52 }
 0x12c   : > { %v329_v53 = vpop.f32.mrf.mxu0  ;;  %v339_v54 = vpop.f32.mrf.mxu1 }
 0x12d   : > { %347 = vst [vmem:[%s971_s29 + $0x8] sm:$0xff] %v329_v53  ;;  %351 = vst [vmem:[%s971_s29 + $0x28] sm:$0xff] %v339_v54  ;;  %357 = sbr.rel (%p1133_p12) target bundleno = 311 (0x137), region = 40 }
 0x12e   : > { %v331_v55 = vpop.f32.mrf.mxu0  ;;  %v341_v56 = vpop.f32.mrf.mxu1 }
 0x12f   : > { %348 = vst [vmem:[%s971_s29 + $0x10] sm:$0xff] %v331_v55  ;;  %352 = vst [vmem:[%s971_s29 + $0x30] sm:$0xff] %v341_v56 }
 0x130   : > { %v333_v57 = vpop.f32.mrf.mxu0  ;;  %v343_v58 = vpop.f32.mrf.mxu1 }
 0x131   : > { %349 = vst [vmem:[%s971_s29 + $0x18] sm:$0xff] %v333_v57  ;;  %353 = vst [vmem:[%s971_s29 + $0x38] sm:$0xff] %v343_v58 }
 0x132   : > { %vm358_vm0 = vcmask 7168   ;;  %v771_v59 = vmov 0.0  }
 0x133   : > { %359 = vst.msk [vmem:[%s1116_s3] sm:$0xff] %vm358_vm0, %v771_v59  ;;  %360 = vst.msk [vmem:[%s1116_s3 + $0x8] sm:$0xff] %vm358_vm0, %v771_v59 }
 0x134   : > { %361 = vst.msk [vmem:[%s1116_s3 + $0x10] sm:$0xff] %vm358_vm0, %v771_v59  ;;  %362 = vst.msk [vmem:[%s1116_s3 + $0x18] sm:$0xff] %vm358_vm0, %v771_v59 }
 0x135   : > { %363 = vst.msk [vmem:[%s1117_s4] sm:$0xff] %vm358_vm0, %v771_v59  ;;  %364 = vst.msk [vmem:[%s1117_s4 + $0x8] sm:$0xff] %vm358_vm0, %v771_v59 }
 0x136   : > { %365 = vst.msk [vmem:[%s1117_s4 + $0x10] sm:$0xff] %vm358_vm0, %v771_v59  ;;  %366 = vst.msk [vmem:[%s1117_s4 + $0x18] sm:$0xff] %vm358_vm0, %v771_v59 }
 0x137 PF: > { %v377_v60 = vadd.f32 %v339_v54, %v337_v52  ;;  %v371_v61 = vadd.f32 %v329_v53, %v327_v51  ;;  %v380_v62 = vadd.f32 %v343_v58, %v341_v56  ;;  %v374_v63 = vadd.f32 %v333_v57, %v331_v55  ;;  %s553_s30 = sshll.u32 %s822_s19, 8  ;;  %s438_s8 = sshll.u32 %s971_s29, 4  ;;  %s1014_s8 = int_to_ptr.vmem [resolvable:$true] %s438_s8 }
 0x138   : > { %v398_v0 = vmul.f32 %v331_v55, %v331_v55  ;;  %v399_v1 = vmul.f32 %v333_v57, %v333_v57  ;;  %v396_v2 = vmul.f32 %v327_v51, %v327_v51  ;;  %v397_v3 = vmul.f32 %v329_v53, %v329_v53  ;;  %s1012_s14 = scalar_lea.hbm %s1115_s2, %s553_s30  ;;  %s425_s22 = scalar_lea.sflag [#allocation4], %s924_s10 }
 0x139   : > { %378 = vadd.xlane.f32.xlu1 %v377_v60  ;;  %372 = vadd.xlane.f32.xlu0 %v371_v61  ;;  %v402_v4 = vmul.f32 %v341_v56, %v341_v56  ;;  %v403_v5 = vmul.f32 %v343_v58, %v343_v58  ;;  %v400_v6 = vmul.f32 %v337_v52, %v337_v52  ;;  %s693_s23 = scalar_lea.vmem %s1014_s8, 1024  ;;  %p1134_p1 = scmp.ne.s32.totalorder %s1124_s27, 0 }
 0x13a   : > { %v407_v7 = vadd.f32 %v399_v1, %v398_v0  ;;  %v404_v8 = vadd.f32 %v397_v3, %v396_v2  ;;  %v401_v9 = vmul.f32 %v339_v54, %v339_v54  ;;  %p694_p13 = scmp.ne.s32.totalorder %s1014_s8, %s693_s23  ;;  %s772_s6 = smov [#allocation7]  }
 0x13b   : > { %v413_v10 = vadd.f32 %v403_v5, %v402_v4  ;;  %s697_s5 = sshll.u32 %s772_s6, 4  ;;  %s698_s5 = int_to_ptr.vmem [resolvable:$false] %s697_s5 }
 0x13c   : > { %v410_v11 = vadd.f32 %v401_v9, %v400_v6  ;;  %p695_p0 = pnand %p694_p13, %p1134_p1  ;;  %s699_s19 = scalar_lea.vmem %s698_s5, 2048 }
 0x13d   : > { %381 = vadd.xlane.f32.xlu1 %v380_v62  ;;  %375 = vadd.xlane.f32.xlu0 %v374_v63  ;;  %p700_p8 = scmp.lt.s32.totalorder %s1014_s8, %s698_s5  ;;  %p701_p9 = scmp.lt.s32.totalorder %s699_s19, %s693_s23 }
 0x13e   : > { %p696_p7 = pneg %p695_p0 }
 0x13f   : > { %p702_p10 = por %p701_p9, %p700_p8 }
 0x141   : > { %408 = vadd.xlane.f32.xlu1 %v407_v7  ;;  %405 = vadd.xlane.f32.xlu0 %v404_v8  ;;  %p703_p5 = pnand %p702_p10, %p696_p7 }
 0x145   : > { %414 = vadd.xlane.f32.xlu1 %v413_v10  ;;  %411 = vadd.xlane.f32.xlu0 %v410_v11 }
 0x146   : > { %706 = shalt.err (!%p703_p5)
}
 0x147   : > { %s707_s29 = scalar_lea.hbm %s1012_s14, 1024  ;;  %s711_s12 = scalar_lea.hbm %s1115_s2, 2048 }
 0x148   : > { %p708_p11 = scmp.ne.s32.totalorder %s1012_s14, %s707_s29  ;;  %p712_p3 = scmp.lt.s32.totalorder %s1012_s14, %s1115_s2 }
 0x149   : > { %p713_p2 = scmp.lt.s32.totalorder %s711_s12, %s707_s29 }
 0x14a   : > { %p709_p6 = pnand %p708_p11, %p1134_p1 }
 0x14b   : > { %p714_p12 = por %p713_p2, %p712_p3 }
 0x14c   : > { %p710_p4 = pneg %p709_p6 }
 0x14e   : > { %p715_p13 = pnand %p714_p12, %p710_p4 }
 0x150   : > { %718 = shalt.err (!%p715_p13)
}
 0x151   : > { %s773_s13 = smov 256   ;;  %s774_s30 = smov 512   ;;  %v369_v12 = vld [vmem:[%s1116_s3 + $0x10] sm:$0xff]  ;;  %v367_v13 = vld [vmem:[%s1116_s3] sm:$0xff]  ;;  %vm387_vm1 = vcmask 7168   ;;  %v370_v18 = vld [vmem:[%s1116_s3 + $0x18] sm:$0xff] }
 0x152   : > { %s775_s25 = smov 16   ;;  %v368_v19 = vld [vmem:[%s1116_s3 + $0x8] sm:$0xff]  ;;  %v392_v25 = vld [vmem:[%s1117_s4] sm:$0xff]  ;;  %v395_v30 = vld [vmem:[%s1117_s4 + $0x18] sm:$0xff] }
 0x153   : > { %576 = dma.vmem_to_hbm [thread:$0]  (%p1134_p1), %s1014_s8, 1024, %s1012_s14, %s425_s22, %s773_s13, %s774_s30, %s775_s25  }
 0x154   : > { %v393_v24 = vld [vmem:[%s1117_s4 + $0x8] sm:$0xff]  ;;  %v394_v31 = vld [vmem:[%s1117_s4 + $0x10] sm:$0xff] }
 0x1c2   : > { %v379_v14 = vpop.xlane.xlu1 %378  ;;  %v373_v15 = vpop.xlane.xlu0 %372 }
 0x1c3   : > { %v385_v16 = vadd.f32 %v379_v14, %v369_v12  ;;  %v383_v17 = vadd.f32 %v373_v15, %v367_v13 }
 0x1c5   : > { %390 = vst.msk [vmem:[%s1116_s3 + $0x10] sm:$0xff] %vm387_vm1, %v385_v16  ;;  %388 = vst.msk [vmem:[%s1116_s3] sm:$0xff] %vm387_vm1, %v383_v17 }
 0x1c6   : > { %v382_v20 = vpop.xlane.xlu1 %381  ;;  %v376_v21 = vpop.xlane.xlu0 %375 }
 0x1c7   : > { %v386_v22 = vadd.f32 %v382_v20, %v370_v18  ;;  %v384_v23 = vadd.f32 %v376_v21, %v368_v19 }
 0x1c9   : > { %391 = vst.msk [vmem:[%s1116_s3 + $0x18] sm:$0xff] %vm387_vm1, %v386_v22  ;;  %389 = vst.msk [vmem:[%s1116_s3 + $0x8] sm:$0xff] %vm387_vm1, %v384_v23 }
 0x1ca   : > { %v409_v26 = vpop.xlane.xlu1 %408  ;;  %v406_v27 = vpop.xlane.xlu0 %405 }
 0x1cb   : > { %v417_v28 = vadd.f32 %v409_v26, %v393_v24  ;;  %v416_v29 = vadd.f32 %v406_v27, %v392_v25 }
 0x1cd   : > { %421 = vst.msk [vmem:[%s1117_s4 + $0x8] sm:$0xff] %vm387_vm1, %v417_v28  ;;  %420 = vst.msk [vmem:[%s1117_s4] sm:$0xff] %vm387_vm1, %v416_v29 }
 0x1ce   : > { %v415_v32 = vpop.xlane.xlu1 %414  ;;  %v412_v33 = vpop.xlane.xlu0 %411 }
 0x1cf   : > { %v419_v34 = vadd.f32 %v415_v32, %v395_v30  ;;  %v418_v35 = vadd.f32 %v412_v33, %v394_v31 }
 0x1d1   : > { %423 = vst.msk [vmem:[%s1117_s4 + $0x18] sm:$0xff] %vm387_vm1, %v419_v34  ;;  %422 = vst.msk [vmem:[%s1117_s4 + $0x10] sm:$0xff] %vm387_vm1, %v418_v35 }
 0x1d2 PF: > { %s465_s12 = sand.u32 1, %s749_s15   ;;  %p1135_p1 = scmp.ne.s32.totalorder %s1125_s28, 0 }
 0x1d3   : > { %p1136_p0 = scmp.ge.s32.totalorder %s761_s18, 2  ;;  %s466_s20 = scalar_lea.sflag [#allocation4], %s465_s12 }
 0x1d5   : > { %p587_p7 = pnand %p1136_p0, %p1135_p1 }
 0x1d7   : > { %p588_p8 = pneg %p587_p7 }
 0x1d9   : > { %744 = dma.done.wait (%p588_p8), %s466_s20, 1024  }
 0x1da   : > { %746 = vsyncadd (%p588_p8), %s466_s20, 4294966272  ;;  %p19_p9 = scmp.ge.s32.totalorder %s826_s21, 4   ;;  %s1137_s15 = smov %s753_s16 }
 0x1db   : > { %s1138_s16 = smov %s757_s17  ;;  %s1139_s17 = smov %s838_s24 }
 0x1dc   : > { %s1140_s18 = smov %s826_s21  ;;  %21 = sbr.rel (!%p19_p9) target bundleno = 6 (0x6), region = 97 }
 0x1e1   :  { %471 = vsyncpa [#allocation3], 1 }
 0x1e2   :  { %473 = vsyncpa [#allocation3 + $0x1], 1 }
 0x1e3   :  { %474 = vsyncpa [#allocation6], 1 }
 0x1e4   :  { %475 = vsyncpa [#allocation4], 1 }
 0x1e5   :  { %477 = vsyncpa [#allocation4 + $0x1], 1 }

</bundles_post_ra>
